<compile_context>
chip_gen: v5e
topology: v5e:2x2
jax: 0.10.0
libtpu: 0.0.40
codegen_flags: <defaults>
</compile_context>

<pallas_src>
import jax
import jax.numpy as jnp
from jax.experimental import pallas as pl
from jax.experimental.pallas import tpu as pltpu

NEG_SLOPE = -0.1  # matches the PyTorch module's negative_slope = -0.1


def _round_up(x, m):
    return ((x + m - 1) // m) * m


def convt_leaky_kernel(x_ref, w_ref, b_ref, o_ref):
    # x_ref: (IC, tm)   -- M on lanes
    # w_ref: (cols, IC) -- cols = kH*kW*OC = 28
    # b_ref: (cols, 1)
    # o_ref: (cols, tm) -- lane-dense output
    ic = x_ref.shape[0]
    x = x_ref[...]
    w = w_ref[...]
    # Unrolled K=IC contraction on the VPU (broadcast multiply-adds).
    acc = b_ref[...] + w[:, 0:1] * x[0:1, :]
    for k in range(1, ic):
        acc = acc + w[:, k:k + 1] * x[k:k + 1, :]
    # where(y > 0, y, y * negative_slope)
    o_ref[...] = jnp.where(acc > 0, acc, acc * NEG_SLOPE)


def conv_transpose_leaky(x_nchw, weight, bias, *, tm_cap=16384):
    """x_nchw: (N, IC, H, W); weight: (IC, OC, 2, 2) [PyTorch ConvTranspose2d
    layout]; bias: (OC,).  Returns (N, OC, 2H, 2W) float32."""
    N, IC, H, W = x_nchw.shape
    IC_w, OC, KH, KW = weight.shape
    assert IC_w == IC and KH == 2 and KW == 2

    M = N * H * W
    cols = KH * KW * OC

    # Input: (N, IC, H, W) -> (IC, N, H, W) -> (IC, M).  M (= n*H*W + h*W + w)
    # sits on the lane axis; only a leading-axes swap, not a full NHWC round trip.
    xT = jnp.transpose(x_nchw, (1, 0, 2, 3)).reshape(IC, M)

    # Weight taps stacked along the sublane axis: col = ki*KW*OC + kj*OC + oc.
    wT = jnp.transpose(weight, (2, 3, 1, 0)).reshape(cols, IC)
    bT = jnp.tile(bias, KH * KW).reshape(cols, 1)

    # One big lane-dense block; cap keeps double-buffered in+out blocks a few
    # MiB, comfortably inside v7x's smaller VMEM as well.
    tm = min(_round_up(M, 128), tm_cap)
    M_pad = _round_up(M, tm)
    if M_pad != M:
        xT = jnp.pad(xT, ((0, 0), (0, M_pad - M)))
    grid = M_pad // tm

    compiler_params = None
    if grid > 1:
        # Only pay 2-TC sharding when there is real work to split.
        compiler_params = pltpu.CompilerParams(dimension_semantics=("parallel",))

    out2d = pl.pallas_call(
        convt_leaky_kernel,
        out_shape=jax.ShapeDtypeStruct((cols, M_pad), jnp.float32),
        grid_spec=pltpu.PrefetchScalarGridSpec(
            num_scalar_prefetch=0,
            grid=(grid,),
            in_specs=[
                pl.BlockSpec((IC, tm), lambda i: (0, i)),
                pl.BlockSpec((cols, IC), lambda i: (0, 0)),
                pl.BlockSpec((cols, 1), lambda i: (0, 0)),
            ],
            out_specs=pl.BlockSpec((cols, tm), lambda i: (0, i)),
        ),
        compiler_params=compiler_params,
    )(xT, wT, bT)

    # Scatter the stacked taps back to (N, OC, 2H, 2W) — pure layout glue.
    y = out2d[:, :M]
    y = y.reshape(KH, KW, OC, N, H, W)
    y = jnp.transpose(y, (3, 2, 4, 0, 5, 1))          # (N, OC, H, KH, W, KW)
    return y.reshape(N, OC, H * KH, W * KW)


def _reference(x_nchw, weight, bias):
    # Pure-JAX reference for the non-overlapping stride-2 transposed conv.
    N, IC, H, W = x_nchw.shape
    _, OC, KH, KW = weight.shape
    y = jnp.einsum("nihw,iokl->nohkwl", x_nchw, weight) \
        + bias[None, :, None, None, None, None]
    y = y.reshape(N, OC, H * KH, W * KW)
    return jnp.where(y > 0, y, y * NEG_SLOPE)


if __name__ == "__main__":
    key = jax.random.PRNGKey(0)
    kx, kw, kb = jax.random.split(key, 3)

    N, IC, H, W = 2, 4, 16, 16
    OC, KH, KW = 7, 2, 2

    x = jax.random.normal(kx, (N, IC, H, W), dtype=jnp.float32)
    # Deterministic synthetic params (ConvTranspose2d weight layout: (IC, OC, kH, kW)).
    fan = IC * KH * KW
    bound = 1.0 / (fan ** 0.5)
    weight = jax.random.uniform(kw, (IC, OC, KH, KW), jnp.float32, -bound, bound)
    bias = jax.random.uniform(kb, (OC,), jnp.float32, -bound, bound)

    out = conv_transpose_leaky(x, weight, bias)
    out = jax.block_until_ready(out)

    ref = _reference(x, weight, bias)
    assert out.shape == (N, OC, H * 2, W * 2)
    assert jnp.allclose(out, ref, atol=1e-5, rtol=1e-5)

    print("KERNEL_OK")
</pallas_src>

<mosaic_0001>
module attributes {stable_mosaic.version = 11 : i64} {
  func.func @convt_leaky_kernel(%arg0: i32, %arg1: memref<4x512xf32, #tpu.memory_space<vmem>>, %arg2: memref<28x4xf32, #tpu.memory_space<vmem>>, %arg3: memref<28x1xf32, #tpu.memory_space<vmem>>, %arg4: memref<28x512xf32, #tpu.memory_space<vmem>>) attributes {dimension_semantics = [#tpu.dimension_semantics<arbitrary>], iteration_bounds = array<i64: 1>, scalar_prefetch = 0 : i64, scratch_operands = 0 : i64, tpu.core_type = #tpu.core_type<tc>, window_params = [{transform_indices = @transform_0, window_bounds = array<i64: 4, 512>}, {pipeline_mode = #tpu.pipeline_mode<synchronous>, transform_indices = @transform_1, window_bounds = array<i64: 28, 4>}, {pipeline_mode = #tpu.pipeline_mode<synchronous>, transform_indices = @transform_2, window_bounds = array<i64: 28, 1>}, {transform_indices = @transform_3, window_bounds = array<i64: 28, 512>}]} {
    %c0 = arith.constant 0 : index
    %c0_0 = arith.constant 0 : index
    %0 = vector.load %arg1[%c0, %c0_0] : memref<4x512xf32, #tpu.memory_space<vmem>>, vector<4x512xf32>
    %c0_1 = arith.constant 0 : index
    %c0_2 = arith.constant 0 : index
    %1 = vector.load %arg2[%c0_1, %c0_2] : memref<28x4xf32, #tpu.memory_space<vmem>>, vector<28x4xf32>
    %c0_3 = arith.constant 0 : index
    %c0_4 = arith.constant 0 : index
    %2 = vector.load %arg3[%c0_3, %c0_4] : memref<28x1xf32, #tpu.memory_space<vmem>>, vector<28x1xf32>
    %3 = vector.extract_strided_slice %1 {offsets = [0, 0], sizes = [28, 1], strides = [1, 1]} : vector<28x4xf32> to vector<28x1xf32>
    %4 = vector.extract_strided_slice %0 {offsets = [0, 0], sizes = [1, 512], strides = [1, 1]} : vector<4x512xf32> to vector<1x512xf32>
    %5 = vector.broadcast %3 : vector<28x1xf32> to vector<28x512xf32>
    %6 = vector.broadcast %4 : vector<1x512xf32> to vector<28x512xf32>
    %7 = arith.mulf %5, %6 : vector<28x512xf32>
    %8 = vector.broadcast %2 : vector<28x1xf32> to vector<28x512xf32>
    %9 = arith.addf %8, %7 : vector<28x512xf32>
    %10 = vector.extract_strided_slice %1 {offsets = [0, 1], sizes = [28, 1], strides = [1, 1]} : vector<28x4xf32> to vector<28x1xf32>
    %11 = vector.extract_strided_slice %0 {offsets = [1, 0], sizes = [1, 512], strides = [1, 1]} : vector<4x512xf32> to vector<1x512xf32>
    %12 = vector.broadcast %10 : vector<28x1xf32> to vector<28x512xf32>
    %13 = vector.broadcast %11 : vector<1x512xf32> to vector<28x512xf32>
    %14 = arith.mulf %12, %13 : vector<28x512xf32>
    %15 = arith.addf %9, %14 : vector<28x512xf32>
    %16 = vector.extract_strided_slice %1 {offsets = [0, 2], sizes = [28, 1], strides = [1, 1]} : vector<28x4xf32> to vector<28x1xf32>
    %17 = vector.extract_strided_slice %0 {offsets = [2, 0], sizes = [1, 512], strides = [1, 1]} : vector<4x512xf32> to vector<1x512xf32>
    %18 = vector.broadcast %16 : vector<28x1xf32> to vector<28x512xf32>
    %19 = vector.broadcast %17 : vector<1x512xf32> to vector<28x512xf32>
    %20 = arith.mulf %18, %19 : vector<28x512xf32>
    %21 = arith.addf %15, %20 : vector<28x512xf32>
    %22 = vector.extract_strided_slice %1 {offsets = [0, 3], sizes = [28, 1], strides = [1, 1]} : vector<28x4xf32> to vector<28x1xf32>
    %23 = vector.extract_strided_slice %0 {offsets = [3, 0], sizes = [1, 512], strides = [1, 1]} : vector<4x512xf32> to vector<1x512xf32>
    %24 = vector.broadcast %22 : vector<28x1xf32> to vector<28x512xf32>
    %25 = vector.broadcast %23 : vector<1x512xf32> to vector<28x512xf32>
    %26 = arith.mulf %24, %25 : vector<28x512xf32>
    %27 = arith.addf %21, %26 : vector<28x512xf32>
    %cst = arith.constant 0.000000e+00 : f32
    %28 = vector.broadcast %cst : f32 to vector<28x512xf32>
    %29 = arith.cmpf ogt, %27, %28 : vector<28x512xf32>
    %cst_5 = arith.constant -1.000000e-01 : f32
    %30 = vector.broadcast %cst_5 : f32 to vector<28x512xf32>
    %31 = arith.mulf %27, %30 : vector<28x512xf32>
    %32 = arith.select %29, %27, %31 : vector<28x512xi1>, vector<28x512xf32>
    %c0_6 = arith.constant 0 : index
    %c0_7 = arith.constant 0 : index
    %33 = vector.load %arg4[%c0_6, %c0_7] : memref<28x512xf32, #tpu.memory_space<vmem>>, vector<28x512xf32>
    tpu.vector_store %arg4[%c0_6, %c0_7], %32 {strides = array<i32>} : memref<28x512xf32, #tpu.memory_space<vmem>>, vector<28x512xf32>,
    return
  }
  func.func @transform_0(%arg0: i32) -> (i32, i32) {
    %c0_i32 = arith.constant 0 : i32
    %c0_i32_0 = arith.constant 0 : i32
    return %c0_i32, %arg0 : i32, i32
  }
  func.func @transform_1(%arg0: i32) -> (i32, i32) {
    %c0_i32 = arith.constant 0 : i32
    %c0_i32_0 = arith.constant 0 : i32
    %c0_i32_1 = arith.constant 0 : i32
    return %c0_i32, %c0_i32_0 : i32, i32
  }
  func.func @transform_2(%arg0: i32) -> (i32, i32) {
    %c0_i32 = arith.constant 0 : i32
    %c0_i32_0 = arith.constant 0 : i32
    %c0_i32_1 = arith.constant 0 : i32
    return %c0_i32, %c0_i32_0 : i32, i32
  }
  func.func @transform_3(%arg0: i32) -> (i32, i32) {
    %c0_i32 = arith.constant 0 : i32
    %c0_i32_0 = arith.constant 0 : i32
    return %c0_i32, %arg0 : i32, i32
  }
}

</mosaic_0001>

<bundles_post_ra>
// kernel: tpu_custom_call.1
= control target key start
LH: loop header
LB: loop body
LE: loop exit
PB: predicated region body
PF: predicated region fallthrough
CT: control target
= control target key end

     0   :  { %v418_v2 = vmov 0   ;;  %s624_s0 = inlined_call_operand.vmem [shape: f32[4,512], index: 0, kind: input, shape index: {}]   ;;  %s625_s1 = inlined_call_operand.vmem [shape: f32[28,4], index: 1, kind: input, shape index: {}]   ;;  %s626_s2 = inlined_call_operand.vmem [shape: f32[28,1], index: 2, kind: input, shape index: {}]   ;;  %s627_s3 = inlined_call_operand.hbm [shape: f32[28,512], index: 3, kind: output, shape index: {}]  }
   0x1   :  { %v19_v0 = vld [vmem:[%s625_s1 + $0x10] sm:$0xff]  ;;  %v17_v1 = vld [vmem:[%s625_s1] sm:$0xff]  ;;  %381 = vset.pattern.permute.xlu1 %v418_v2  ;;  %380 = vset.pattern.permute.xlu0 %v418_v2 }
   0x2   :  { %v21_v3 = vld [vmem:[%s626_s2] sm:$0xff]  ;;  %37 = vperm.xlu1 %381, %v19_v0   ;;  %27 = vperm.xlu0 %380, %v17_v1  }
   0x3   :  { %8 = vsyncpa [#allocation3], 0  ;;  %382 = vset.pattern.permute.xlu2 %v418_v2  ;;  %v20_v4 = vld [vmem:[%s625_s1 + $0x18] sm:$0xf]  ;;  %v18_v5 = vld [vmem:[%s625_s1 + $0x8] sm:$0xff]  ;;  %v419_v9 = vmov 1  }
   0x4   :  { %77 = vperm.xlu2 %382, %v21_v3   ;;  %v22_v6 = vld [vmem:[%s626_s2 + $0x8] sm:$0xff]  ;;  %v24_v7 = vld [vmem:[%s626_s2 + $0x18] sm:$0xf]  ;;  %v23_v8 = vld [vmem:[%s626_s2 + $0x10] sm:$0xff]  ;;  %v420_v10 = vmov 2   ;;  %v421_v11 = vmov 3  }
   0x5   :  { %v15_v17 = vld [vmem:[%s624_s0] sm:$0xff]  ;;  %v16_v18 = vld [vmem:[%s624_s0 + $0x8] sm:$0xff]  ;;  %s422_s0 = smov [#allocation2]   ;;  %s361_s6 = sshll.u32 %s627_s3, 4  ;;  %s362_s6 = int_to_ptr.hbm [resolvable:$true] %s361_s6 }
   0x6   :  { %v47_v20 = vperm.slane %v15_v17, 0  ;;  %v48_v21 = vperm.slane %v15_v17, 4  ;;  %v49_v22 = vperm.slane %v16_v18, 0  ;;  %v50_v23 = vperm.slane %v16_v18, 4  ;;  %s617_s30 = sshll.u32 %s422_s0, 4  ;;  %s423_s3 = smov 512   ;;  %s360_s30 = int_to_ptr.vmem [resolvable:$true] %s617_s30 }
   0x7   :  { %v127_v24 = vperm.slane %v15_v17, 1  ;;  %v128_v25 = vperm.slane %v15_v17, 5  ;;  %v129_v26 = vperm.slane %v16_v18, 1  ;;  %v130_v29 = vperm.slane %v16_v18, 5  ;;  %s424_s7 = smov 32  }
   0x8   :  { %v55_v30 = vperm.slane %v47_v20, 0  ;;  %v56_v31 = vperm.slane %v48_v21, 0  ;;  %v57_v32 = vperm.slane %v49_v22, 0  ;;  %v58_v33 = vperm.slane %v50_v23, 0 }
   0x9   :  { %v187_v34 = vperm.slane %v15_v17, 2  ;;  %v188_v35 = vperm.slane %v15_v17, 6  ;;  %v189_v36 = vperm.slane %v16_v18, 2  ;;  %v479_v37 = vperm.slane %v127_v24, 1 }
   0xa   :  { %42 = vperm.xlu1 %381, %v20_v4   ;;  %32 = vperm.xlu0 %380, %v18_v5   ;;  %v481_v38 = vperm.slane %v128_v25, 1  ;;  %v483_v39 = vperm.slane %v129_v26, 1  ;;  %v190_v41 = vperm.slane %v16_v18, 6  ;;  %v487_v42 = vperm.slane %v130_v29, 1 }
   0xb   :  { %v247_v43 = vperm.slane %v15_v17, 3  ;;  %v248_v44 = vperm.slane %v15_v17, 7  ;;  %v249_v45 = vperm.slane %v16_v18, 3  ;;  %v250_v49 = vperm.slane %v16_v18, 7 }
   0xc   :  { %82 = vperm.xlu2 %382, %v22_v6   ;;  %v489_v51 = vperm.slane %v187_v34, 2  ;;  %v491_v52 = vperm.slane %v188_v35, 2  ;;  %v493_v53 = vperm.slane %v189_v36, 2  ;;  %v498_v59 = vperm.slane %v190_v41, 2 }
   0xd   :  { %v501_v61 = vperm.slane %v247_v43, 3  ;;  %v503_v62 = vperm.slane %v248_v44, 3  ;;  %v505_v63 = vperm.slane %v249_v45, 3  ;;  %v507_v3 = vperm.slane %v250_v49, 3 }
  0x12   :  { %92 = vperm.xlu1 %381, %v24_v7   ;;  %87 = vperm.xlu0 %380, %v23_v8  }
  0x14   :  { %383 = vset.pattern.permute.xlu2 %v419_v9 }
  0x15   :  { %112 = vperm.xlu2 %383, %v17_v1  }
  0x1a   :  { %385 = vset.pattern.permute.xlu1 %v419_v9  ;;  %384 = vset.pattern.permute.xlu0 %v419_v9 }
  0x1b   :  { %120 = vperm.xlu1 %385, %v19_v0   ;;  %116 = vperm.xlu0 %384, %v18_v5  }
  0x1d   :  { %124 = vperm.xlu2 %383, %v20_v4  }
  0x23   :  { %386 = vset.pattern.permute.xlu1 %v420_v10  ;;  %388 = vset.pattern.permute.xlu0 %v420_v10 }
  0x24   :  { %172 = vperm.xlu1 %386, %v17_v1   ;;  %180 = vperm.xlu0 %388, %v19_v0  }
  0x25   :  { %387 = vset.pattern.permute.xlu2 %v420_v10 }
  0x26   :  { %176 = vperm.xlu2 %387, %v18_v5  }
  0x2c   :  { %184 = vperm.xlu1 %386, %v20_v4   ;;  %391 = vset.pattern.permute.xlu0 %v421_v11 }
  0x2d   :  { %244 = vperm.xlu0 %391, %v20_v4  }
  0x2e   :  { %389 = vset.pattern.permute.xlu2 %v421_v11 }
  0x2f   :  { %232 = vperm.xlu2 %389, %v17_v1  }
  0x34   :  { %390 = vset.pattern.permute.xlu1 %v421_v11 }
  0x35   :  { %236 = vperm.xlu1 %390, %v18_v5  }
  0x37   :  { %240 = vperm.xlu2 %389, %v19_v0  }
  0x5e   :  { %v78_v12 = vpop.permute.xlu2 %77 }
  0x66   :  { %v469_v13 = vpop.permute.xlu2 %82 }
  0x6f   :  { %v113_v14 = vpop.permute.xlu2 %112 }
  0x70   :  { %v139_v54 = vmul.f32 %v479_v37, %v113_v14  ;;  %v140_v55 = vmul.f32 %v481_v38, %v113_v14  ;;  %v141_v56 = vmul.f32 %v483_v39, %v113_v14  ;;  %v142_v60 = vmul.f32 %v487_v42, %v113_v14 }
  0x74   :  { %v38_v15 = vpop.permute.xlu1 %37  ;;  %v28_v16 = vpop.permute.xlu0 %27 }
  0x75   :  { %v59_v46 = vmul.f32 %v55_v30, %v28_v16  ;;  %v60_v47 = vmul.f32 %v56_v31, %v28_v16  ;;  %v61_v48 = vmul.f32 %v57_v32, %v28_v16  ;;  %v62_v50 = vmul.f32 %v58_v33, %v28_v16 }
  0x76   :  { %v67_v4 = vmul.f32 %v55_v30, %v38_v15  ;;  %v68_v5 = vmul.f32 %v56_v31, %v38_v15  ;;  %v69_v6 = vmul.f32 %v57_v32, %v38_v15  ;;  %v70_v8 = vmul.f32 %v58_v33, %v38_v15 }
  0x77   :  { %v477_v19 = vpop.permute.xlu2 %124  ;;  %v95_v0 = vadd.f32 %v78_v12, %v59_v46  ;;  %v96_v1 = vadd.f32 %v78_v12, %v60_v47  ;;  %v97_v2 = vadd.f32 %v78_v12, %v61_v48  ;;  %v98_v7 = vadd.f32 %v78_v12, %v62_v50 }
  0x78   :  { %v151_v16 = vmul.f32 %v479_v37, %v477_v19  ;;  %v152_v17 = vmul.f32 %v481_v38, %v477_v19  ;;  %v153_v18 = vmul.f32 %v483_v39, %v477_v19  ;;  %v154_v15 = vmul.f32 %v487_v42, %v477_v19 }
  0x79   :  { %v515_v21 = vadd.f32 %v139_v54, %v95_v0  ;;  %v517_v22 = vadd.f32 %v140_v55, %v96_v1  ;;  %v519_v12 = vadd.f32 %v141_v56, %v97_v2  ;;  %v523_v23 = vadd.f32 %v142_v60, %v98_v7 }
  0x7c   :  { %v43_v27 = vpop.permute.xlu1 %42  ;;  %v33_v28 = vpop.permute.xlu0 %32 }
  0x7d   :  { %v63_v9 = vmul.f32 %v55_v30, %v33_v28  ;;  %v64_v10 = vmul.f32 %v56_v31, %v33_v28  ;;  %v65_v11 = vmul.f32 %v57_v32, %v33_v28  ;;  %v66_v14 = vmul.f32 %v58_v33, %v33_v28 }
  0x7e   :  { %v71_v24 = vmul.f32 %v55_v30, %v43_v27  ;;  %v72_v25 = vmul.f32 %v56_v31, %v43_v27  ;;  %v73_v26 = vmul.f32 %v57_v32, %v43_v27  ;;  %v74_v28 = vmul.f32 %v58_v33, %v43_v27 }
  0x7f   :  { %v99_v29 = vadd.f32 %v469_v13, %v63_v9  ;;  %v100_v34 = vadd.f32 %v469_v13, %v64_v10  ;;  %v101_v35 = vadd.f32 %v469_v13, %v65_v11  ;;  %v529_v36 = vadd.f32 %v469_v13, %v66_v14 }
  0x80   :  { %v485_v40 = vpop.permute.xlu2 %176 }
  0x81   :  { %v533_v41 = vmul.f32 %v489_v51, %v485_v40  ;;  %v537_v19 = vmul.f32 %v491_v52, %v485_v40  ;;  %v541_v27 = vmul.f32 %v493_v53, %v485_v40  ;;  %v545_v47 = vmul.f32 %v498_v59, %v485_v40 }
  0x84   :  { %v93_v57 = vpop.permute.xlu1 %92  ;;  %v88_v58 = vpop.permute.xlu0 %87 }
  0x85   :  { %v107_v32 = vadd.f32 %v93_v57, %v71_v24  ;;  %v108_v33 = vadd.f32 %v93_v57, %v72_v25  ;;  %v109_v43 = vadd.f32 %v93_v57, %v73_v26  ;;  %v110_v44 = vadd.f32 %v93_v57, %v74_v28 }
  0x86   :  { %v103_v13 = vadd.f32 %v88_v58, %v67_v4  ;;  %v104_v45 = vadd.f32 %v88_v58, %v68_v5  ;;  %v105_v46 = vadd.f32 %v88_v58, %v69_v6  ;;  %v106_v48 = vadd.f32 %v88_v58, %v70_v8 }
  0x87   :  { %v554_v0 = vadd.f32 %v151_v16, %v107_v32  ;;  %v556_v1 = vadd.f32 %v152_v17, %v108_v33  ;;  %v558_v40 = vadd.f32 %v153_v18, %v109_v43  ;;  %v560_v58 = vadd.f32 %v154_v15, %v110_v44 }
  0x89   :  { %v233_v20 = vpop.permute.xlu2 %232 }
  0x8a   :  { %v259_v2 = vmul.f32 %v501_v61, %v233_v20  ;;  %v260_v4 = vmul.f32 %v503_v62, %v233_v20  ;;  %v261_v5 = vmul.f32 %v505_v63, %v233_v20 }
  0x8d   :  { %v121_v30 = vpop.permute.xlu1 %120  ;;  %v117_v31 = vpop.permute.xlu0 %116 }
  0x8e   :  { %v147_v49 = vmul.f32 %v479_v37, %v121_v30  ;;  %v148_v50 = vmul.f32 %v481_v38, %v121_v30  ;;  %v149_v54 = vmul.f32 %v483_v39, %v121_v30  ;;  %v150_v55 = vmul.f32 %v487_v42, %v121_v30 }
  0x8f   :  { %v143_v56 = vmul.f32 %v479_v37, %v117_v31  ;;  %v144_v57 = vmul.f32 %v481_v38, %v117_v31  ;;  %v145_v60 = vmul.f32 %v483_v39, %v117_v31  ;;  %v262_v37 = vmul.f32 %v507_v3, %v233_v20 }
  0x90   :  { %v163_v38 = vadd.f32 %v147_v49, %v103_v13  ;;  %v164_v7 = vadd.f32 %v148_v50, %v104_v45  ;;  %v165_v39 = vadd.f32 %v149_v54, %v105_v46  ;;  %v146_v8 = vmul.f32 %v487_v42, %v117_v31 }
  0x91   :  { %v241_v6 = vpop.permute.xlu2 %240  ;;  %v166_v9 = vadd.f32 %v150_v55, %v106_v48  ;;  %v567_v10 = vadd.f32 %v143_v56, %v99_v29  ;;  %v569_v11 = vadd.f32 %v144_v57, %v100_v34  ;;  %v571_v14 = vadd.f32 %v145_v60, %v101_v35 }
  0x92   :  { %v267_v18 = vmul.f32 %v501_v61, %v241_v6  ;;  %v268_v15 = vmul.f32 %v503_v62, %v241_v6  ;;  %v269_v20 = vmul.f32 %v505_v63, %v241_v6  ;;  %v270_v24 = vmul.f32 %v507_v3, %v241_v6 }
  0x96   :  { %v173_v16 = vpop.permute.xlu1 %172  ;;  %v181_v17 = vpop.permute.xlu0 %180 }
  0x97   :  { %v199_v25 = vmul.f32 %v489_v51, %v173_v16  ;;  %v200_v42 = vmul.f32 %v491_v52, %v173_v16  ;;  %v201_v26 = vmul.f32 %v493_v53, %v173_v16  ;;  %v202_v28 = vmul.f32 %v498_v59, %v173_v16 }
  0x98   :  { %v207_v29 = vmul.f32 %v489_v51, %v181_v17  ;;  %v208_v34 = vmul.f32 %v491_v52, %v181_v17  ;;  %v209_v35 = vmul.f32 %v493_v53, %v181_v17  ;;  %v210_v30 = vmul.f32 %v498_v59, %v181_v17 }
  0x99   :  { %v215_v31 = vadd.f32 %v199_v25, %v515_v21  ;;  %v216_v32 = vadd.f32 %v200_v42, %v517_v22  ;;  %v217_v33 = vadd.f32 %v201_v26, %v519_v12  ;;  %v218_v43 = vadd.f32 %v202_v28, %v523_v23 }
  0x9a   :  { %v223_v44 = vadd.f32 %v207_v29, %v163_v38  ;;  %v224_v13 = vadd.f32 %v208_v34, %v164_v7  ;;  %v225_v45 = vadd.f32 %v209_v35, %v165_v39  ;;  %v226_v46 = vadd.f32 %v210_v30, %v166_v9 }
  0x9b   :  { %v275_v48 = vadd.f32 %v259_v2, %v215_v31  ;;  %v276_v49 = vadd.f32 %v260_v4, %v216_v32  ;;  %v277_v50 = vadd.f32 %v261_v5, %v217_v33  ;;  %v278_v54 = vadd.f32 %v262_v37, %v218_v43 }
  0x9c   :  { %v283_v55 = vadd.f32 %v267_v18, %v223_v44  ;;  %v284_v56 = vadd.f32 %v268_v15, %v224_v13  ;;  %v285_v57 = vadd.f32 %v269_v20, %v225_v45  ;;  %v286_v60 = vadd.f32 %v270_v24, %v226_v46 }
  0x9d   :  { %vm291_vm0 = vcmp.gt.f32.partialorder %v275_v48, 0.0  ;;  %vm292_vm1 = vcmp.gt.f32.partialorder %v276_v49, 0.0  ;;  %vm293_vm2 = vcmp.gt.f32.partialorder %v277_v50, 0.0  ;;  %vm294_vm3 = vcmp.gt.f32.partialorder %v278_v54, 0.0 }
  0x9e   :  { %v162_v21 = vadd.f32 %v146_v8, %v529_v36  ;;  %v307_v22 = vmul.f32 -0.1, %v275_v48  ;;  %v308_v12 = vmul.f32 -0.1, %v276_v49  ;;  %v309_v23 = vmul.f32 -0.1, %v277_v50  ;;  %v185_v6 = vpop.permute.xlu1 %184 }
  0x9f   :  { %v310_v38 = vmul.f32 -0.1, %v278_v54  ;;  %vm299_vm4 = vcmp.gt.f32.partialorder %v283_v55, 0.0  ;;  %vm300_vm5 = vcmp.gt.f32.partialorder %v284_v56, 0.0  ;;  %vm301_vm6 = vcmp.gt.f32.partialorder %v285_v57, 0.0  ;;  %v245_v18 = vpop.permute.xlu0 %244 }
  0xa0   :  { %v323_v2 = vsel %vm291_vm0, %v275_v48, %v307_v22  ;;  %v324_v4 = vsel %vm292_vm1, %v276_v49, %v308_v12  ;;  %v325_v5 = vsel %vm293_vm2, %v277_v50, %v309_v23  ;;  %vm302_vm7 = vcmp.gt.f32.partialorder %v286_v60, 0.0 }
  0xa1   :  { %v326_v37 = vsel %vm294_vm3, %v278_v54, %v310_v38  ;;  %339 = vst [vmem:[#allocation2] sm:$0xff] %v323_v2  ;;  %v315_v7 = vmul.f32 -0.1, %v283_v55  ;;  %v316_v39 = vmul.f32 -0.1, %v284_v56  ;;  %v211_v9 = vmul.f32 %v489_v51, %v185_v6 }
  0xa2   :  { %340 = vst [vmem:[#allocation2 + $0x8] sm:$0xff] %v324_v4  ;;  %v317_v36 = vmul.f32 -0.1, %v285_v57  ;;  %v318_v8 = vmul.f32 -0.1, %v286_v60  ;;  %v212_v16 = vmul.f32 %v491_v52, %v185_v6  ;;  %v213_v17 = vmul.f32 %v493_v53, %v185_v6 }
  0xa3   :  { %341 = vst [vmem:[#allocation2 + $0x10] sm:$0xff] %v325_v5  ;;  %v331_v15 = vsel %vm299_vm4, %v283_v55, %v315_v7  ;;  %v332_v20 = vsel %vm300_vm5, %v284_v56, %v316_v39  ;;  %v214_v24 = vmul.f32 %v498_v59, %v185_v6  ;;  %v227_v25 = vadd.f32 %v211_v9, %v554_v0 }
  0xa4   :  { %342 = vst [vmem:[#allocation2 + $0x18] sm:$0xff] %v326_v37  ;;  %v333_v51 = vsel %vm301_vm6, %v285_v57, %v317_v36  ;;  %v334_v42 = vsel %vm302_vm7, %v286_v60, %v318_v8  ;;  %v228_v26 = vadd.f32 %v212_v16, %v556_v1  ;;  %v229_v52 = vadd.f32 %v213_v17, %v558_v40 }
  0xa5   :  { %347 = vst [vmem:[#allocation2 + $0x40] sm:$0xff] %v331_v15  ;;  %v230_v53 = vadd.f32 %v214_v24, %v560_v58  ;;  %v271_v28 = vmul.f32 %v501_v61, %v245_v18  ;;  %v272_v29 = vmul.f32 %v503_v62, %v245_v18  ;;  %v273_v59 = vmul.f32 %v505_v63, %v245_v18 }
  0xa6   :  { %348 = vst [vmem:[#allocation2 + $0x48] sm:$0xff] %v332_v20  ;;  %v274_v0 = vmul.f32 %v507_v3, %v245_v18  ;;  %v219_v34 = vadd.f32 %v533_v41, %v567_v10  ;;  %v220_v1 = vadd.f32 %v537_v19, %v569_v11  ;;  %v221_v40 = vadd.f32 %v541_v27, %v571_v14 }
  0xa7   :  { %349 = vst [vmem:[#allocation2 + $0x50] sm:$0xff] %v333_v51  ;;  %v287_v58 = vadd.f32 %v271_v28, %v227_v25  ;;  %v288_v35 = vadd.f32 %v272_v29, %v228_v26  ;;  %v289_v30 = vadd.f32 %v273_v59, %v229_v52  ;;  %v237_v31 = vpop.permute.xlu1 %236  ;;  %v222_v32 = vadd.f32 %v545_v47, %v162_v21 }
  0xa8   :  { %350 = vst [vmem:[#allocation2 + $0x58] sm:$0xff] %v334_v42  ;;  %v290_v33 = vadd.f32 %v274_v0, %v230_v53  ;;  %v263_v43 = vmul.f32 %v501_v61, %v237_v31  ;;  %v264_v44 = vmul.f32 %v503_v62, %v237_v31  ;;  %v265_v41 = vmul.f32 %v505_v63, %v237_v31 }
  0xa9   :  { %vm303_vm8 = vcmp.gt.f32.partialorder %v287_v58, 0.0  ;;  %vm304_vm9 = vcmp.gt.f32.partialorder %v288_v35, 0.0  ;;  %vm305_vm10 = vcmp.gt.f32.partialorder %v289_v30, 0.0  ;;  %v319_v19 = vmul.f32 -0.1, %v287_v58 }
  0xaa   :  { %vm306_vm11 = vcmp.gt.f32.partialorder %v290_v33, 0.0  ;;  %v320_v27 = vmul.f32 -0.1, %v288_v35  ;;  %v321_v10 = vmul.f32 -0.1, %v289_v30  ;;  %v266_v11 = vmul.f32 %v507_v3, %v237_v31 }
  0xab   :  { %v322_v14 = vmul.f32 -0.1, %v290_v33  ;;  %v335_v13 = vsel %vm303_vm8, %v287_v58, %v319_v19  ;;  %v279_v47 = vadd.f32 %v263_v43, %v219_v34  ;;  %v280_v45 = vadd.f32 %v264_v44, %v220_v1 }
  0xac   :  { %v336_v46 = vsel %vm304_vm9, %v288_v35, %v320_v27  ;;  %v337_v48 = vsel %vm305_vm10, %v289_v30, %v321_v10  ;;  %351 = vst [vmem:[#allocation2 + $0x60] sm:$0xf] %v335_v13  ;;  %v281_v61 = vadd.f32 %v265_v41, %v221_v40  ;;  %v282_v62 = vadd.f32 %v266_v11, %v222_v32 }
  0xad   :  { %v338_v63 = vsel %vm306_vm11, %v290_v33, %v322_v14  ;;  %352 = vst [vmem:[#allocation2 + $0x68] sm:$0xf] %v336_v46  ;;  %vm295_vm12 = vcmp.gt.f32.partialorder %v279_v47, 0.0  ;;  %vm296_vm13 = vcmp.gt.f32.partialorder %v280_v45, 0.0  ;;  %v311_v3 = vmul.f32 -0.1, %v279_v47 }
  0xae   :  { %353 = vst [vmem:[#allocation2 + $0x70] sm:$0xf] %v337_v48  ;;  %vm297_vm14 = vcmp.gt.f32.partialorder %v281_v61, 0.0  ;;  %vm298_vm15 = vcmp.gt.f32.partialorder %v282_v62, 0.0  ;;  %v312_v49 = vmul.f32 -0.1, %v280_v45 }
  0xaf   :  { %354 = vst [vmem:[#allocation2 + $0x78] sm:$0xf] %v338_v63  ;;  %v313_v50 = vmul.f32 -0.1, %v281_v61  ;;  %v314_v54 = vmul.f32 -0.1, %v282_v62  ;;  %v327_v55 = vsel %vm295_vm12, %v279_v47, %v311_v3 }
  0xb0   :  { %v328_v56 = vsel %vm296_vm13, %v280_v45, %v312_v49  ;;  %343 = vst [vmem:[#allocation2 + $0x20] sm:$0xff] %v327_v55 }
  0xb1   :  { %v329_v57 = vsel %vm297_vm14, %v281_v61, %v313_v50  ;;  %v330_v60 = vsel %vm298_vm15, %v282_v62, %v314_v54  ;;  %344 = vst [vmem:[#allocation2 + $0x28] sm:$0xff] %v328_v56 }
  0xb2   :  { %345 = vst [vmem:[#allocation2 + $0x30] sm:$0xff] %v329_v57 }
  0xb3   :  { %346 = vst [vmem:[#allocation2 + $0x38] sm:$0xff] %v330_v60 }
  0xb4   :  { %367 = dma.vmem_to_hbm [thread:$0]  %s360_s30, 2048, %s362_s6, [#allocation3], %s423_s3, %s423_s3, %s424_s7  }
  0xb5   :  { %416 = dma.done.wait [#allocation3], 2048  }
  0xb6   :  { %417 = vsyncadd [#allocation3], 4294965248 }
  0xb7   :  { %372 = vsyncpa [#allocation3], 1 }

</bundles_post_ra>
